<compile_context>
chip_gen: v6e
topology: v6e:2x2x1
jax: 0.10.0
libtpu: 0.0.40
codegen_flags: <defaults>
</compile_context>

<pallas_src>
import functools

import jax
import jax.numpy as jnp
from jax.experimental import pallas as pl
from jax.experimental.pallas import tpu as pltpu


def _classify_kernel_single(x_ref, w_ref, b_ref, o_ref):
    # x_ref: (n_tile, C1, HW)  w_ref: (C1, C2p) (already scaled by 1/HW)
    # b_ref: (1, C2p)          o_ref: (1, n_tile, C2p)
    pooled = jnp.sum(x_ref[...], axis=-1, dtype=jnp.float32)          # (n_tile, C1)
    out = jnp.dot(pooled.astype(w_ref.dtype), w_ref[...],
                  preferred_element_type=jnp.float32)
    out = out + b_ref[...].astype(jnp.float32)
    o_ref[...] = out.reshape(o_ref.shape).astype(o_ref.dtype)


def _classify_kernel_multi(x_ref, w_ref, b_ref, o_ref, acc_ref, *, hw, hw_tile):
    # x_ref: (n_tile, C1, hw_tile)  acc_ref: (n_tile, C1, 128) f32 scratch
    # w_ref: (C1, C2p) (already scaled by 1/HW)  b_ref: (1, C2p)
    # o_ref: (1, n_tile, C2p)
    s = pl.program_id(1)

    @pl.when(s == 0)
    def _init():
        acc_ref[...] = jnp.zeros_like(acc_ref)

    n_chunks = hw_tile // 128                 # hw_tile is a multiple of 128 here
    has_tail = (hw % hw_tile) != 0            # static

    partial = None
    for j in range(n_chunks):                 # static unrolled; pure VPU adds
        chunk = x_ref[:, :, j * 128:(j + 1) * 128].astype(jnp.float32)
        if has_tail:
            col = (jax.lax.broadcasted_iota(jnp.int32, chunk.shape, 2)
                   + s * hw_tile + j * 128)
            chunk = jnp.where(col < hw, chunk, 0.0)   # OOB lanes are not zero
        partial = chunk if partial is None else partial + chunk
    acc_ref[...] += partial

    @pl.when(s == pl.num_programs(1) - 1)
    def _finalize():
        pooled = jnp.sum(acc_ref[...], axis=-1)        # one 128->1 XLU reduce
        out = jnp.dot(pooled.astype(w_ref.dtype), w_ref[...],
                      preferred_element_type=jnp.float32)
        out = out + b_ref[...].astype(jnp.float32)
        o_ref[...] = out.reshape(o_ref.shape).astype(o_ref.dtype)


def classify_forward(x_nchw, weight, bias, *, x_tile_budget_bytes=8 << 20):
    """x_nchw: (N, C1, H, W); weight: (C2, C1, 1, 1); bias: (C2,) -> (N, C2)."""
    N, C1, H, W = x_nchw.shape
    C2 = weight.shape[0]
    assert weight.shape[2:] == (1, 1), "Classify default ctor => 1x1 pointwise conv"
    HW = H * W
    dtype = x_nchw.dtype
    itemsize = jnp.dtype(dtype).itemsize

    # ---- tiling: shrink batch tile first, keep spatial DMA runs long --------
    min_hw_tile = 512 if itemsize >= 4 else 1024

    n_tile = min(N, 8)                         # no batch padding for small N
    if N >= 2:
        n_tile = min(n_tile, (N + 1) // 2)     # >=2 batch blocks (v7x megacore)
    while (n_tile > 1
           and n_tile * C1 * min(HW, min_hw_tile) * itemsize > x_tile_budget_bytes):
        n_tile = max(1, n_tile // 2)

    if n_tile * C1 * HW * itemsize <= x_tile_budget_bytes:
        hw_tile = HW                           # full spatial extent, 1 step
    else:
        hw_tile = (x_tile_budget_bytes // (n_tile * C1 * itemsize)) // 128 * 128
        hw_tile = max(128, min(hw_tile, pl.cdiv(HW, 128) * 128))
        if hw_tile >= HW:
            hw_tile = HW

    n_blocks = pl.cdiv(N, n_tile)
    hw_blocks = pl.cdiv(HW, hw_tile)
    c2_pad = max(128, pl.cdiv(C2, 128) * 128)  # lane-dense output

    # ---- wrapper-side layout: only the small weight/bias are touched --------
    x_flat = x_nchw.reshape(N, C1, HW)                       # no activation copy
    inv_hw = 1.0 / float(HW)
    w_t = (weight.reshape(C2, C1).T * inv_hw).astype(weight.dtype)   # fold mean
    w_t = jnp.pad(w_t, ((0, 0), (0, c2_pad - C2)))                   # (C1, C2p)
    b_row = jnp.pad(bias, (0, c2_pad - C2)).reshape(1, c2_pad)

    out_shape = jax.ShapeDtypeStruct((n_blocks, n_tile, c2_pad), dtype)

    if hw_blocks == 1:
        kernel = _classify_kernel_single
        grid = (n_blocks,)
        in_specs = [
            pl.BlockSpec((n_tile, C1, hw_tile), lambda nb: (nb, 0, 0)),
            pl.BlockSpec((C1, c2_pad), lambda nb: (0, 0)),
            pl.BlockSpec((1, c2_pad), lambda nb: (0, 0)),
        ]
        out_specs = pl.BlockSpec((1, n_tile, c2_pad), lambda nb: (nb, 0, 0))
        scratch_shapes = []
        semantics = ("parallel",)
    else:
        kernel = functools.partial(_classify_kernel_multi, hw=HW, hw_tile=hw_tile)
        grid = (n_blocks, hw_blocks)
        in_specs = [
            pl.BlockSpec((n_tile, C1, hw_tile), lambda nb, sb: (nb, 0, sb)),
            pl.BlockSpec((C1, c2_pad), lambda nb, sb: (0, 0)),
            pl.BlockSpec((1, c2_pad), lambda nb, sb: (0, 0)),
        ]
        out_specs = pl.BlockSpec((1, n_tile, c2_pad), lambda nb, sb: (nb, 0, 0))
        scratch_shapes = [pltpu.VMEM((n_tile, C1, 128), jnp.float32)]
        semantics = ("parallel", "arbitrary")

    out = pl.pallas_call(
        kernel,
        out_shape=out_shape,
        grid_spec=pltpu.PrefetchScalarGridSpec(
            num_scalar_prefetch=0,
            grid=grid,
            in_specs=in_specs,
            out_specs=out_specs,
            scratch_shapes=scratch_shapes,
        ),
        compiler_params=pltpu.CompilerParams(
            dimension_semantics=semantics,
            vmem_limit_bytes=48 << 20),
    )(x_flat, w_t, b_row)

    return out.reshape(n_blocks * n_tile, c2_pad)[:N, :C2]


def _reference(x, weight, bias):
    C2, C1 = weight.shape[0], weight.shape[1]
    pooled = jnp.mean(x.astype(jnp.float32), axis=(2, 3))            # (N, C1)
    return pooled @ weight.reshape(C2, C1).astype(jnp.float32).T + \
        bias.astype(jnp.float32)[None, :]


def _check(key, N, C1, H, W, C2, **kwargs):
    k1, k2, k3, key = jax.random.split(key, 4)
    x = jax.random.normal(k1, (N, C1, H, W), dtype=jnp.float32)
    w = jax.random.normal(k2, (C2, C1, 1, 1), dtype=jnp.float32) * 0.1
    b = jax.random.normal(k3, (C2,), dtype=jnp.float32) * 0.1
    out = classify_forward(x, w, b, **kwargs)
    jax.block_until_ready(out)
    ref = _reference(x, w, b)
    assert out.shape == (N, C2)
    assert jnp.allclose(out, ref, atol=1e-5, rtol=1e-5), \
        float(jnp.max(jnp.abs(out - ref)))
    return key


if __name__ == "__main__":
    key = jax.random.PRNGKey(0)

    # Case 1: "nice" shapes; single-step spatial path, 2 batch blocks of 1 row.
    key = _check(key, N=2, C1=4, H=32, W=32, C2=8)

    # Case 2: odd sizes; exercises partial batch block + non-128 full-HW block
    #         + C2 padding.
    key = _check(key, N=3, C1=5, H=10, W=10, C2=7)

    # Case 3: force the multi-step spatial path (tiny per-tile budget) with a
    #         partial, masked last spatial block (400 = 3*128 + 16).
    key = _check(key, N=2, C1=8, H=20, W=20, C2=10, x_tile_budget_bytes=4096)

    print("KERNEL_OK")
</pallas_src>

<mosaic_0001>
module attributes {stable_mosaic.version = 11 : i64} {
  func.func @_classify_kernel_single(%arg0: i32, %arg1: memref<1x4x1024xf32, #tpu.memory_space<vmem>>, %arg2: memref<4x128xf32, #tpu.memory_space<vmem>>, %arg3: memref<1x128xf32, #tpu.memory_space<vmem>>, %arg4: memref<1x1x128xf32, #tpu.memory_space<vmem>>) attributes {dimension_semantics = [#tpu.dimension_semantics<parallel>], iteration_bounds = array<i64: 2>, scalar_prefetch = 0 : i64, scratch_operands = 0 : i64, tpu.core_type = #tpu.core_type<tc>, window_params = [{transform_indices = @transform_0, window_bounds = array<i64: 1, 4, 1024>}, {pipeline_mode = #tpu.pipeline_mode<synchronous>, transform_indices = @transform_1, window_bounds = array<i64: 4, 128>}, {pipeline_mode = #tpu.pipeline_mode<synchronous>, transform_indices = @transform_2, window_bounds = array<i64: 1, 128>}, {transform_indices = @transform_3, window_bounds = array<i64: 1, 1, 128>}]} {
    %c0 = arith.constant 0 : index
    %c0_0 = arith.constant 0 : index
    %c0_1 = arith.constant 0 : index
    %0 = vector.load %arg1[%c0, %c0_0, %c0_1] : memref<1x4x1024xf32, #tpu.memory_space<vmem>>, vector<1x4x1024xf32>
    %cst = arith.constant dense<0.000000e+00> : vector<1x4xf32>
    %1 = vector.multi_reduction <add>, %0, %cst [2] : vector<1x4x1024xf32> to vector<1x4xf32>
    %c0_2 = arith.constant 0 : index
    %c0_3 = arith.constant 0 : index
    %2 = vector.load %arg2[%c0_2, %c0_3] : memref<4x128xf32, #tpu.memory_space<vmem>>, vector<4x128xf32>
    %cst_4 = arith.constant dense<0.000000e+00> : vector<1x128xf32>
    %3 = tpu.matmul %1, %2, %cst_4 {dimension_numbers = #tpu.dot_dimension_numbers<[1], [0], [0], [1], [0, 0, 1, 1], [], []>} : vector<1x4xf32>, vector<4x128xf32>, vector<1x128xf32> -> vector<1x128xf32>
    %c0_5 = arith.constant 0 : index
    %c0_6 = arith.constant 0 : index
    %4 = vector.load %arg3[%c0_5, %c0_6] : memref<1x128xf32, #tpu.memory_space<vmem>>, vector<1x128xf32>
    %5 = arith.addf %3, %4 : vector<1x128xf32>
    %6 = vector.shape_cast %5 : vector<1x128xf32> to vector<1x1x128xf32>
    %c0_7 = arith.constant 0 : index
    %c0_8 = arith.constant 0 : index
    %c0_9 = arith.constant 0 : index
    %7 = vector.load %arg4[%c0_7, %c0_8, %c0_9] : memref<1x1x128xf32, #tpu.memory_space<vmem>>, vector<1x1x128xf32>
    tpu.vector_store %arg4[%c0_7, %c0_8, %c0_9], %6 {strides = array<i32>} : memref<1x1x128xf32, #tpu.memory_space<vmem>>, vector<1x1x128xf32>,
    return
  }
  func.func @transform_0(%arg0: i32) -> (i32, i32, i32) {
    %c0_i32 = arith.constant 0 : i32
    %c0_i32_0 = arith.constant 0 : i32
    %c0_i32_1 = arith.constant 0 : i32
    return %arg0, %c0_i32, %c0_i32_0 : i32, i32, i32
  }
  func.func @transform_1(%arg0: i32) -> (i32, i32) {
    %c0_i32 = arith.constant 0 : i32
    %c0_i32_0 = arith.constant 0 : i32
    %c0_i32_1 = arith.constant 0 : i32
    return %c0_i32, %c0_i32_0 : i32, i32
  }
  func.func @transform_2(%arg0: i32) -> (i32, i32) {
    %c0_i32 = arith.constant 0 : i32
    %c0_i32_0 = arith.constant 0 : i32
    %c0_i32_1 = arith.constant 0 : i32
    return %c0_i32, %c0_i32_0 : i32, i32
  }
  func.func @transform_3(%arg0: i32) -> (i32, i32, i32) {
    %c0_i32 = arith.constant 0 : i32
    %c0_i32_0 = arith.constant 0 : i32
    %c0_i32_1 = arith.constant 0 : i32
    return %arg0, %c0_i32, %c0_i32_0 : i32, i32, i32
  }
}

</mosaic_0001>

<bundles_post_ra>
// kernel: tpu_custom_call.1
= control target key start
LH: loop header
LB: loop body
LE: loop exit
PB: predicated region body
PF: predicated region fallthrough
CT: control target
= control target key end

     0   :  { %8 = vsyncpa [#allocation3], 0  ;;  %s828_s0 = inlined_call_operand.hbm [shape: f32[2,4,1024], index: 0, kind: input, shape index: {}]   ;;  %s829_s1 = inlined_call_operand.hbm [shape: f32[4,128], index: 1, kind: input, shape index: {}]   ;;  %s830_s2 = inlined_call_operand.vmem [shape: f32[1,128], index: 2, kind: input, shape index: {}]   ;;  %s831_s3 = inlined_call_operand.hbm [shape: f32[2,1,128], index: 3, kind: output, shape index: {}]  }
   0x1   :  { %10 = vsyncpa [#allocation3 + $0x1], 0 }
   0x2   :  { %11 = vsyncpa [#allocation6], 0 }
   0x3   :  { %12 = vsyncpa [#allocation4], 0 }
   0x4   :  { %14 = vsyncpa [#allocation4 + $0x1], 0  ;;  %s643_s12 = smov 0   ;;  %s645_s13 = smov 0  }
   0x5   :  { %s647_s14 = smov 0   ;;  %s649_s15 = smov 0  }
   0x6 LB: > { %s664_s16 = sadd.s32 4294967295, %s616_s15   ;;  %s408_s17 = sadd.s32 4294967294, %s616_s15   ;;  %s616_s15 = sphi %s649_s15, %s854_s15   ;;  %s612_s14 = sphi %s647_s14, %s853_s14   ;;  %s608_s13 = sphi %s645_s13, %s852_s13   ;;  %s604_s12 = sphi %s643_s12, %s851_s12  }
   0x7   : > { %p40_p0 = scmp.ne.s32.totalorder %s608_s13, %s604_s12  ;;  %p832_p1 = scmp.eq.s32.totalorder %s664_s16, 0 }
   0x8   : > { %p112_p3 = scmp.eq.s32.totalorder %s408_s17, 1  ;;  %p409_p5 = scmp.ge.s32.totalorder %s616_s15, 1 }
   0x9   : > { %p673_p4 = por %p832_p1, %p40_p0  ;;  %p119_p7 = scmp.lt.s32.totalorder %s616_s15, 3 }
   0xa   : > { %p678_p6 = por %p112_p3, %p40_p0  ;;  %s618_s21 = smov [#allocation5]  }
   0xb   : > { %s836_s18 = scalar_select %p673_p4, 1, 0 }
   0xc   : > { %s837_s19 = scalar_select %p678_p6, 1, 0 }
   0xd   : > { %p683_p8 = pnand %p409_p5, %p119_p7  ;;  %s132_s22 = sshll.u32 %s618_s21, 4  ;;  %s133_s22 = int_to_ptr.vmem [resolvable:$true] %s132_s22 }
   0xe   : > { %s691_s23 = sadd.s32 1, %s616_s15   ;;  %s27_s27 = sadd.s32 1, %s612_s14 }
   0xf   : > { %s838_s20 = scalar_select %p683_p8, 1, 0 }
  0x10   : > { %p439_p10 = pneg %p683_p8  ;;  %s24_s25 = ssub.s32 %s616_s15, %s691_s23 }
  0x11   : > { %p701_p12 = scmp.eq.s32.totalorder %s24_s25, 0  ;;  %p34_p13 = scmp.ne.s32.totalorder %s612_s14, %s608_s13 }
  0x12   : > { %p695_p11 = pnand %p439_p10, %p832_p1  ;;  %s505_s28 = scalar_lea.vmem %s133_s22, 64 }
  0x13   : > { %p506_p3 = scmp.ne.s32.totalorder %s133_s22, %s505_s28  ;;  %p513_p9 = scmp.lt.s32.totalorder %s133_s22, %s133_s22 }
  0x14   : > { %p496_p0 = pneg %p695_p11  ;;  %p514_p2 = scmp.lt.s32.totalorder %s505_s28, %s505_s28 }
  0x16   : > { %p508_p5 = pnand %p506_p3, %p496_p0  ;;  %p515_p10 = por %p514_p2, %p513_p9 }
  0x18   : > { %p509_p7 = pneg %p508_p5 }
  0x1a   : > { %p516_p1 = pnand %p515_p10, %p509_p7 }
  0x1c   : > { %519 = shalt.err (!%p516_p1)
}
  0x1d   : > { %442 = dma.hbm_to_vmem [thread:$0]  (!%p695_p11), %s829_s1, 64, %s133_s22, [#allocation6]  }
  0x1e   : > { %s718_s4 = scalar_select %p701_p12, %s612_s14, %s27_s27  }
  0x1f   : > { %p35_p1 = scmp.eq.s32.totalorder %s616_s15, 0  ;;  %p841_p2 = scmp.eq.s32.totalorder %s664_s16, 1 }
  0x20   : > { %p452_p0 = scmp.lt.s32.totalorder %s616_s15, 2  ;;  %s146_s6 = sand.u32 1, %s612_s14  }
  0x21   : > { %p726_p9 = por %p841_p2, %p34_p13  ;;  %p36_p3 = por %p35_p1, %p34_p13 }
  0x22   : > { %s412_s7 = sshll.u32 %s146_s6, 5  ;;  %s423_s8 = sshll.u32 %s616_s15, 9 }
  0x23   : > { %s842_s5 = scalar_select %p726_p9, 1, 0 }
  0x24   : > { %s739_s11 = scalar_lea.hbm %s828_s0, %s423_s8  ;;  %s150_s17 = scalar_lea.vmem [#allocation2], %s412_s7 }
  0x25   : > { %s158_s21 = sshll.u32 %s150_s17, 4  ;;  %p741_p11 = pnand %p452_p0, %p36_p3  ;;  %s159_s21 = int_to_ptr.vmem [resolvable:$true] %s158_s21 }
  0x26   : > { %s147_s24 = scalar_lea.sflag [#allocation3], %s146_s6  ;;  %s520_s25 = scalar_lea.hbm %s739_s11, 512 }
  0x27   : > { %p521_p12 = scmp.ne.s32.totalorder %s739_s11, %s520_s25  ;;  %p522_p13 = pneg %p741_p11 }
  0x28   : > { %s525_s28 = scalar_lea.hbm %s828_s0, 1024  ;;  %p526_p10 = scmp.lt.s32.totalorder %s739_s11, %s828_s0 }
  0x29   : > { %p523_p5 = pnand %p522_p13, %p521_p12  ;;  %p527_p1 = scmp.lt.s32.totalorder %s525_s28, %s520_s25 }
  0x2b   : > { %p524_p7 = pneg %p523_p5  ;;  %p528_p2 = por %p527_p1, %p526_p10 }
  0x2d   : > { %p529_p0 = pnand %p528_p2, %p524_p7 }
  0x2f   : > { %532 = shalt.err (!%p529_p0)
}
  0x30   : > { %s533_s7 = scalar_lea.vmem %s159_s21, 512  ;;  %s619_s6 = smov [#allocation2]  }
  0x31   : > { %p534_p3 = scmp.ne.s32.totalorder %s159_s21, %s533_s7  ;;  %s538_s8 = sshll.u32 %s619_s6, 4  ;;  %s539_s8 = int_to_ptr.vmem [resolvable:$false] %s538_s8 }
  0x32   : > { %s540_s9 = scalar_lea.vmem %s539_s8, 1024  ;;  %p541_p12 = scmp.lt.s32.totalorder %s159_s21, %s539_s8 }
  0x33   : > { %p536_p6 = pnand %p534_p3, %p522_p13  ;;  %p542_p5 = scmp.lt.s32.totalorder %s540_s9, %s533_s7 }
  0x35   : > { %p537_p9 = pneg %p536_p6  ;;  %p543_p4 = por %p542_p5, %p541_p12 }
  0x37   : > { %p544_p8 = pnand %p543_p4, %p537_p9 }
  0x39   : > { %547 = shalt.err (!%p544_p8)
}
  0x3a   : > { %446 = dma.hbm_to_vmem [thread:$0]  (!%p741_p11), %s739_s11, 512, %s159_s21, %s147_s24  }
  0x3b   : > { %p844_p7 = scmp.ne.s32.totalorder %s838_s20, 0 }
  0x3c   : > { %s762_s10 = sand.u32 (!%p844_p7), 1, %s608_s13   ;;  %p845_p6 = scmp.ne.s32.totalorder (!%p844_p7), %s836_s18, 0 }
  0x3d   : > { %167 = sbr.rel (%p844_p7) target bundleno = 436 (0x1b4), region = 32  ;;  %s416_s17 = sshll.u32 (!%p844_p7), %s762_s10, 5 }
  0x3e   : > { %s170_s25 = scalar_lea.sflag (!%p844_p7), [#allocation3], %s762_s10  ;;  %s173_s26 = scalar_lea.vmem (!%p844_p7), [#allocation2], %s416_s17 }
  0x42   : > { %591 = dma.done.wait (%p845_p6), %s170_s25, 512  }
  0x43   : > { %593 = vsyncadd (%p845_p6), %s170_s25, 4294966784  ;;  %p846_p4 = scmp.eq.s32.totalorder %s664_s16, 0 }
  0x45   : > { %595 = dma.done.wait (%p846_p4), [#allocation6], 64   ;;  %p847_p8 = pmov %p846_p4 }
  0x46   : > { %vm215_vm0 = vcmask 1043456   ;;  %v199_v0 = vld [vmem:[%s173_s26] sm:$0xff]  ;;  %v200_v1 = vld [vmem:[%s173_s26 + $0x8] sm:$0xff]  ;;  %v201_v5 = vld [vmem:[%s173_s26 + $0x10] sm:$0xff]  ;;  %v620_v23 = vmov 0.0   ;;  %vm621_vm1 = vmmov 0   ;;  %v236_v25 = vlaneseq }
  0x47   : > { %597 = vsyncadd (%p847_p8), [#allocation6], 4294967232  ;;  %v207_v2 = vcombine.high %v199_v0, %v199_v0  ;;  %v208_v3 = vcombine.high %v200_v1, %v200_v1  ;;  %v216_v4 = vsel %vm215_vm0, %v199_v0, 0.0  ;;  %v219_v7 = vsel %vm215_vm0, %v200_v1, 0.0  ;;  %v202_v11 = vld [vmem:[%s173_s26 + $0x18] sm:$0xff]  ;;  %426 = vmatprep.subr.mxu0 %v620_v23  ;;  %428 = vmatprep.mubr.msk.f32.mxu0 %vm621_vm1, %v620_v23  ;;  %s420_s11 = sshll.u32 %s664_s16, 4 }
  0x48   : > { %v209_v9 = vcombine.high %v201_v5, %v201_v5  ;;  %v223_v13 = vsel %vm215_vm0, %v201_v5, 0.0  ;;  %v210_v15 = vcombine.high %v202_v11, %v202_v11  ;;  %v227_v18 = vsel %vm215_vm0, %v202_v11, 0.0  ;;  %v233_v24 = vld [vmem:[#allocation5] sm:$0xf]  ;;  %s198_s21 = scalar_lea.vmem [#allocation7], %s762_s10  ;;  %s791_s28 = scalar_lea.hbm %s831_s3, %s420_s11 }
  0x49   : > { %v217_v6 = vsel %vm215_vm0, %v207_v2, 0.0  ;;  %v221_v10 = vsel %vm215_vm0, %v208_v3, 0.0  ;;  %427 = vmatpush3.msk.msra.mxu0 %vm215_vm0, %v233_v24  ;;  %v237_v26 = vand.u32 127, %v236_v25  ;;  %v239_v27 = vshrl.u32 %v236_v25, 7  ;;  %v234_v31 = vld [vmem:[%s830_s2] sm:$0x1] }
  0x4a   : > { %v218_v8 = vadd.f32 %v217_v6, %v216_v4  ;;  %v225_v16 = vsel %vm215_vm0, %v209_v9, 0.0  ;;  %v229_v20 = vsel %vm215_vm0, %v210_v15, 0.0  ;;  %vm242_vm2 = vcmask 31744   ;;  %s332_s22 = sshll.u32 %s198_s21, 4  ;;  %s320_s29 = scalar_lea.sflag [#allocation4], %s762_s10  ;;  %s333_s22 = int_to_ptr.vmem [resolvable:$true] %s332_s22 }
  0x4b   : > { %v240_v28 = vsub.s32 %v237_v26, %v239_v27  ;;  %s548_s30 = scalar_lea.vmem %s333_s22, 16  ;;  %p848_p11 = scmp.ne.s32.totalorder %s842_s5, 0 }
  0x4c   : > { %v220_v12 = vadd.f32 %v219_v7, %v218_v8  ;;  %p549_p9 = scmp.ne.s32.totalorder %s333_s22, %s548_s30  ;;  %s622_s7 = smov [#allocation7]  }
  0x4d   : > { %s552_s16 = sshll.u32 %s622_s7, 4  ;;  %s553_s16 = int_to_ptr.vmem [resolvable:$false] %s552_s16 }
  0x4e   : > { %v222_v14 = vadd.f32 %v221_v10, %v220_v12  ;;  %p550_p13 = pnand %p549_p9, %p848_p11  ;;  %s554_s6 = scalar_lea.vmem %s553_s16, 32 }
  0x4f   : > { %p555_p1 = scmp.lt.s32.totalorder %s333_s22, %s553_s16  ;;  %p556_p2 = scmp.lt.s32.totalorder %s554_s6, %s548_s30 }
  0x50   : > { %v224_v17 = vadd.f32 %v223_v13, %v222_v14  ;;  %p551_p10 = pneg %p550_p13 }
  0x51   : > { %p557_p0 = por %p556_p2, %p555_p1 }
  0x52   : > { %v226_v19 = vadd.f32 %v225_v16, %v224_v17 }
  0x53   : > { %p558_p3 = pnand %p557_p0, %p551_p10 }
  0x54   : > { %v228_v21 = vadd.f32 %v227_v18, %v226_v19 }
  0x56   : > { %v230_v22 = vadd.f32 %v229_v20, %v228_v21 }
  0x58   : > { %231 = vadd.xlane.f32.xlu0 %v230_v22 }
  0xe1   : > { %v232_v29 = vpop.xlane.xlu0 %231 }
  0xe2   : > { %v241_v30 = vrot.slane %v232_v29, %v240_v28 }
  0xe4   : > { %429 = vmatmul.mubr.msk.f32.vlgmr.msra.gmra.mxu0 %vm242_vm2, %v241_v30 }
 0x1a4   : > { %v314_v32 = vpop.f32.mrf.mxu0 }
 0x1a5   : > { %v315_v33 = vadd.f32 %v314_v32, %v234_v31 }
 0x1a6   : > { %v430_v34 = vpop.f32.mrf.mxu0 }
 0x1a7   : > { %318 = vst [vmem:[%s198_s21] sm:$0x1] %v315_v33 }
 0x1a8   : > { %561 = shalt.err (!%p558_p3)
}
 0x1a9   : > { %s562_s8 = scalar_lea.hbm %s791_s28, 16  ;;  %s566_s17 = scalar_lea.hbm %s831_s3, 32 }
 0x1aa   : > { %p563_p12 = scmp.ne.s32.totalorder %s791_s28, %s562_s8  ;;  %p567_p6 = scmp.lt.s32.totalorder %s791_s28, %s831_s3 }
 0x1ab   : > { %p568_p4 = scmp.lt.s32.totalorder %s566_s17, %s562_s8 }
 0x1ac   : > { %p564_p5 = pnand %p563_p12, %p848_p11 }
 0x1ad   : > { %p569_p8 = por %p568_p4, %p567_p6 }
 0x1ae   : > { %p565_p7 = pneg %p564_p5 }
 0x1b0   : > { %p570_p9 = pnand %p569_p8, %p565_p7 }
 0x1b2   : > { %573 = shalt.err (!%p570_p9)
}
 0x1b3   : > { %437 = dma.vmem_to_hbm [thread:$0]  (%p848_p11), %s333_s22, 16, %s791_s28, %s320_s29  }
 0x1b4 PF: > { %s344_s18 = sand.u32 1, %s604_s12   ;;  %p849_p13 = scmp.ne.s32.totalorder %s837_s19, 0 }
 0x1b5   : > { %p850_p10 = scmp.ge.s32.totalorder %s616_s15, 2  ;;  %s345_s20 = scalar_lea.sflag [#allocation4], %s344_s18 }
 0x1b7   : > { %p448_p1 = pnand %p850_p10, %p849_p13 }
 0x1b9   : > { %p449_p2 = pneg %p448_p1 }
 0x1bb   : > { %599 = dma.done.wait (%p449_p2), %s345_s20, 16  }
 0x1bc   : > { %601 = vsyncadd (%p449_p2), %s345_s20, 4294967280  ;;  %p17_p0 = scmp.ge.s32.totalorder %s691_s23, 4   ;;  %s851_s12 = smov %s608_s13 }
 0x1bd   : > { %s852_s13 = smov %s612_s14  ;;  %s853_s14 = smov %s718_s4 }
 0x1be   : > { %s854_s15 = smov %s691_s23  ;;  %19 = sbr.rel (!%p17_p0) target bundleno = 6 (0x6), region = 81 }
 0x1c3   :  { %349 = vsyncpa [#allocation3], 1 }
 0x1c4   :  { %351 = vsyncpa [#allocation3 + $0x1], 1 }
 0x1c5   :  { %352 = vsyncpa [#allocation6], 1 }
 0x1c6   :  { %353 = vsyncpa [#allocation4], 1 }
 0x1c7   :  { %355 = vsyncpa [#allocation4 + $0x1], 1 }

</bundles_post_ra>
